<compile_context>
chip_gen: v5e
topology: v5e:2x2
jax: 0.10.0
libtpu: 0.0.40
codegen_flags: <defaults>
</compile_context>

<pallas_src>
import jax
import jax.numpy as jnp
from jax.experimental import pallas as pl
from jax.experimental.pallas import tpu as pltpu


def _mlp_kernel(x_ref, w1_ref, b1_ref, w2_ref, b2_ref, w3_ref, b3_ref, o_ref):
    # Layer 1: Linear (bf16 MXU, f32 accum) + bias + ReLU in f32
    x = x_ref[...].astype(jnp.bfloat16)
    h1 = jnp.dot(x, w1_ref[...], preferred_element_type=jnp.float32)
    h1 = jnp.maximum(h1 + b1_ref[...], 0.0)
    # Layer 2
    h2 = jnp.dot(h1.astype(jnp.bfloat16), w2_ref[...],
                 preferred_element_type=jnp.float32)
    h2 = jnp.maximum(h2 + b2_ref[...], 0.0)
    # Output layer (no activation)
    out = jnp.dot(h2.astype(jnp.bfloat16), w3_ref[...],
                  preferred_element_type=jnp.float32) + b3_ref[...]
    o_ref[...] = out.astype(o_ref.dtype)


def _round_up(a, m):
    return ((a + m - 1) // m) * m


def _const_spec(shape):
    """Whole-array, grid-invariant BlockSpec; single-buffered when supported."""
    try:
        return pl.BlockSpec(shape, lambda i: (0, 0), pipeline_mode=pl.Buffered(1))
    except TypeError:
        return pl.BlockSpec(shape, lambda i: (0, 0))


def _tpu_caps():
    """(num_tensorcores_per_chip, vmem_capacity_bytes) with safe fallbacks."""
    num_cores, vmem = 1, 64 * 1024 * 1024
    try:
        info = pltpu.get_tpu_info()
        vmem = int(getattr(info, "vmem_capacity_bytes", vmem))
        for attr in ("num_cores", "tensorcore_count", "num_tensorcores",
                     "cores_per_chip"):
            v = getattr(info, attr, None)
            if v:
                num_cores = int(v)
                break
    except Exception:
        pass
    return num_cores, vmem


def dqn_forward(x, params, input_dim, *, batch_tile=4096):
    """Forward pass of DQNNetwork (2-D input), fused 3-layer MLP Pallas kernel.

    Matches the PyTorch forward semantics: if x has fewer features than
    input_dim it is (logically) zero-padded, if more the extras are ignored.
    """
    w1, b1, w2, b2, w3, b3 = params
    B, F = x.shape

    # --- feature-dim handling: never touch x in HBM, adjust w1 instead -------
    if F < input_dim:
        # zero-padded x columns would contribute nothing: use only the first F
        # rows of w1 (exact, bias still added).
        w1 = w1[:F, :]
    elif F > input_dim:
        # extra x columns are ignored by PyTorch: multiply them by zero rows of
        # w1 instead of slicing x (avoids an extra HBM pass over the batch).
        w1 = jnp.concatenate(
            [w1, jnp.zeros((F - input_dim, w1.shape[1]), w1.dtype)], axis=0)
    k_dim = F

    h1_dim = w1.shape[1]
    h2_dim = w2.shape[1]
    out_dim = w3.shape[1]

    # bf16 weights for the MXU (one-time few-KB cast); biases stay f32.
    w1 = w1.astype(jnp.bfloat16)
    w2 = w2.astype(jnp.bfloat16)
    w3 = w3.astype(jnp.bfloat16)

    num_cores, vmem_cap = _tpu_caps()

    # --- batch tiling: big tiles amortize ~0.35us/step overhead --------------
    bt = max(8, min(batch_tile, _round_up(B, 8)))
    bt = _round_up(bt, 8)
    steps = pl.cdiv(B, bt)
    if num_cores >= 2:
        # Megacore (v7x): shard the parallel batch axis across TCs, but only
        # when each core gets >= ~512 rows; prefer an even step count.
        min_rows_per_core = 512
        if B >= 2 * min_rows_per_core:
            if steps == 1:
                bt = _round_up(pl.cdiv(B, 2), 8)
            elif steps % 2 == 1:
                bt = _round_up(pl.cdiv(B, steps + 1), 8)
            steps = pl.cdiv(B, bt)
    grid = (steps,)

    # --- VMEM budgeting -------------------------------------------------------
    bytes_x = x.dtype.itemsize
    weight_bytes = (2 * (k_dim * h1_dim + h1_dim * h2_dim + h2_dim * out_dim)
                    + 4 * (h1_dim + h2_dim + out_dim))
    est_vmem = (2 * bt * (k_dim * bytes_x + out_dim * 4)   # in/out tiles (double-buffered)
                + 4 * bt * (h1_dim + h2_dim)               # f32 intermediates
                + 2 * bt * (k_dim + h1_dim + h2_dim)       # bf16 copies feeding MXU
                + weight_bytes)                            # weights, single-buffered
    compiler_kwargs = dict(dimension_semantics=("parallel",))
    default_scope = 16 * 1024 * 1024  # smallest default scoped VMEM (v5e)
    if est_vmem > (3 * default_scope) // 4:
        cap = min((3 * vmem_cap) // 4, 48 * 1024 * 1024)
        compiler_kwargs["vmem_limit_bytes"] = min(
            max(int(1.5 * est_vmem), default_scope), cap)

    # --- scheduler hint -------------------------------------------------------
    flops = 2 * B * (k_dim * h1_dim + h1_dim * h2_dim + h2_dim * out_dim)
    bytes_accessed = B * (k_dim * bytes_x + out_dim * 4) + weight_bytes
    cost = pl.CostEstimate(flops=flops, transcendentals=0,
                           bytes_accessed=bytes_accessed)

    out = pl.pallas_call(
        _mlp_kernel,
        out_shape=jax.ShapeDtypeStruct((B, out_dim), x.dtype),
        grid_spec=pltpu.PrefetchScalarGridSpec(
            num_scalar_prefetch=0,
            grid=grid,
            in_specs=[
                # x: tiled over batch, full feature dim.
                pl.BlockSpec((bt, k_dim), lambda i: (i, 0)),
                # weights / biases: whole arrays, constant index -> resident.
                _const_spec((k_dim, h1_dim)),
                _const_spec((1, h1_dim)),
                _const_spec((h1_dim, h2_dim)),
                _const_spec((1, h2_dim)),
                _const_spec((h2_dim, out_dim)),
                _const_spec((1, out_dim)),
            ],
            out_specs=pl.BlockSpec((bt, out_dim), lambda i: (i, 0)),
        ),
        compiler_params=pltpu.CompilerParams(**compiler_kwargs),
        cost_estimate=cost,
    )(x, w1, b1, w2, b2, w3, b3)
    return out


def init_params(key, input_dim, hidden_dims, output_dim):
    """Deterministic init mimicking torch.nn.Linear default U[-1/sqrt(fan_in), 1/sqrt(fan_in)]."""
    dims = [input_dim] + list(hidden_dims) + [output_dim]
    params = []
    for i in range(len(dims) - 1):
        fan_in, fan_out = dims[i], dims[i + 1]
        key, kw, kb = jax.random.split(key, 3)
        bound = 1.0 / (fan_in ** 0.5)
        w = jax.random.uniform(kw, (fan_in, fan_out), jnp.float32, -bound, bound)
        b = jax.random.uniform(kb, (1, fan_out), jnp.float32, -bound, bound)
        params.extend([w, b])
    return tuple(params)


def ref_forward(x, params, input_dim):
    """Plain-JAX reference with the same numerics as the kernel
    (PyTorch pad/truncate semantics, bf16 matmuls, f32 accumulation)."""
    w1, b1, w2, b2, w3, b3 = params
    B, F = x.shape
    if F < input_dim:
        x = jnp.concatenate([x, jnp.zeros((B, input_dim - F), x.dtype)], axis=1)
    elif F > input_dim:
        x = x[:, :input_dim]

    def lin(h, w, b):
        return jnp.dot(h.astype(jnp.bfloat16), w.astype(jnp.bfloat16),
                       preferred_element_type=jnp.float32) + b

    h1 = jnp.maximum(lin(x, w1, b1), 0.0)
    h2 = jnp.maximum(lin(h1, w2, b2), 0.0)
    return lin(h2, w3, b3)


if __name__ == "__main__":
    input_dim = 32
    output_dim = 8
    hidden_dims = [128, 64]

    key = jax.random.PRNGKey(0)
    key, k1, k2, k3, k4 = jax.random.split(key, 5)
    params = init_params(key, input_dim, hidden_dims, output_dim)

    cases = [
        # (name, input, batch_tile) — exercise pad / exact / truncate branches
        # plus a multi-step grid with a ragged final tile.
        ("pad F<input_dim",        jax.random.normal(k1, (8, 24), jnp.float32), 4096),
        ("exact F==input_dim",     jax.random.normal(k2, (16, 32), jnp.float32), 4096),
        ("truncate F>input_dim",   jax.random.normal(k3, (24, 40), jnp.float32), 4096),
        ("multi-step ragged grid", jax.random.normal(k4, (40, 32), jnp.float32), 16),
    ]

    for name, x, bt in cases:
        out = jax.block_until_ready(dqn_forward(x, params, input_dim, batch_tile=bt))
        ref = ref_forward(x, params, input_dim)
        assert out.shape == (x.shape[0], output_dim), name
        # bf16 matmul / f32 accumulation: allow tiny reassociation differences.
        assert jnp.allclose(out, ref, atol=2e-2, rtol=2e-2), name

    print("KERNEL_OK")
</pallas_src>

<mosaic_0001>
module attributes {stable_mosaic.version = 11 : i64} {
  func.func @_mlp_kernel(%arg0: i32, %arg1: memref<8x24xf32, #tpu.memory_space<vmem>>, %arg2: memref<24x128xbf16, #tpu.memory_space<vmem>>, %arg3: memref<1x128xf32, #tpu.memory_space<vmem>>, %arg4: memref<128x64xbf16, #tpu.memory_space<vmem>>, %arg5: memref<1x64xf32, #tpu.memory_space<vmem>>, %arg6: memref<64x8xbf16, #tpu.memory_space<vmem>>, %arg7: memref<1x8xf32, #tpu.memory_space<vmem>>, %arg8: memref<8x8xf32, #tpu.memory_space<vmem>>) attributes {dimension_semantics = [#tpu.dimension_semantics<parallel>], iteration_bounds = array<i64: 1>, scalar_prefetch = 0 : i64, scratch_operands = 0 : i64, tpu.core_type = #tpu.core_type<tc>, window_params = [{transform_indices = @transform_0, window_bounds = array<i64: 8, 24>}, {pipeline_mode = #tpu.pipeline_mode<synchronous>, transform_indices = @transform_1, window_bounds = array<i64: 24, 128>}, {pipeline_mode = #tpu.pipeline_mode<synchronous>, transform_indices = @transform_2, window_bounds = array<i64: 1, 128>}, {pipeline_mode = #tpu.pipeline_mode<synchronous>, transform_indices = @transform_3, window_bounds = array<i64: 128, 64>}, {pipeline_mode = #tpu.pipeline_mode<synchronous>, transform_indices = @transform_4, window_bounds = array<i64: 1, 64>}, {pipeline_mode = #tpu.pipeline_mode<synchronous>, transform_indices = @transform_5, window_bounds = array<i64: 64, 8>}, {pipeline_mode = #tpu.pipeline_mode<synchronous>, transform_indices = @transform_6, window_bounds = array<i64: 1, 8>}, {transform_indices = @transform_7, window_bounds = array<i64: 8, 8>}]} {
    %c0 = arith.constant 0 : index
    %c0_0 = arith.constant 0 : index
    %0 = vector.load %arg1[%c0, %c0_0] : memref<8x24xf32, #tpu.memory_space<vmem>>, vector<8x24xf32>
    %1 = arith.truncf %0 : vector<8x24xf32> to vector<8x24xbf16>
    %c0_1 = arith.constant 0 : index
    %c0_2 = arith.constant 0 : index
    %2 = vector.load %arg2[%c0_1, %c0_2] : memref<24x128xbf16, #tpu.memory_space<vmem>>, vector<24x128xbf16>
    %cst = arith.constant dense<0.000000e+00> : vector<8x128xf32>
    %3 = tpu.matmul %1, %2, %cst {dimension_numbers = #tpu.dot_dimension_numbers<[1], [0], [0], [1], [0, 0, 1, 1], [], []>} : vector<8x24xbf16>, vector<24x128xbf16>, vector<8x128xf32> -> vector<8x128xf32>
    %c0_3 = arith.constant 0 : index
    %c0_4 = arith.constant 0 : index
    %4 = vector.load %arg3[%c0_3, %c0_4] : memref<1x128xf32, #tpu.memory_space<vmem>>, vector<1x128xf32>
    %5 = vector.broadcast %4 : vector<1x128xf32> to vector<8x128xf32>
    %6 = arith.addf %3, %5 : vector<8x128xf32>
    %cst_5 = arith.constant 0.000000e+00 : f32
    %7 = vector.broadcast %cst_5 : f32 to vector<8x128xf32>
    %8 = arith.maximumf %6, %7 : vector<8x128xf32>
    %9 = arith.truncf %8 : vector<8x128xf32> to vector<8x128xbf16>
    %c0_6 = arith.constant 0 : index
    %c0_7 = arith.constant 0 : index
    %10 = vector.load %arg4[%c0_6, %c0_7] : memref<128x64xbf16, #tpu.memory_space<vmem>>, vector<128x64xbf16>
    %cst_8 = arith.constant dense<0.000000e+00> : vector<8x64xf32>
    %11 = tpu.matmul %9, %10, %cst_8 {dimension_numbers = #tpu.dot_dimension_numbers<[1], [0], [0], [1], [0, 0, 1, 1], [], []>} : vector<8x128xbf16>, vector<128x64xbf16>, vector<8x64xf32> -> vector<8x64xf32>
    %c0_9 = arith.constant 0 : index
    %c0_10 = arith.constant 0 : index
    %12 = vector.load %arg5[%c0_9, %c0_10] : memref<1x64xf32, #tpu.memory_space<vmem>>, vector<1x64xf32>
    %13 = vector.broadcast %12 : vector<1x64xf32> to vector<8x64xf32>
    %14 = arith.addf %11, %13 : vector<8x64xf32>
    %cst_11 = arith.constant 0.000000e+00 : f32
    %15 = vector.broadcast %cst_11 : f32 to vector<8x64xf32>
    %16 = arith.maximumf %14, %15 : vector<8x64xf32>
    %17 = arith.truncf %16 : vector<8x64xf32> to vector<8x64xbf16>
    %c0_12 = arith.constant 0 : index
    %c0_13 = arith.constant 0 : index
    %18 = vector.load %arg6[%c0_12, %c0_13] : memref<64x8xbf16, #tpu.memory_space<vmem>>, vector<64x8xbf16>
    %cst_14 = arith.constant dense<0.000000e+00> : vector<8x8xf32>
    %19 = tpu.matmul %17, %18, %cst_14 {dimension_numbers = #tpu.dot_dimension_numbers<[1], [0], [0], [1], [0, 0, 1, 1], [], []>} : vector<8x64xbf16>, vector<64x8xbf16>, vector<8x8xf32> -> vector<8x8xf32>
    %c0_15 = arith.constant 0 : index
    %c0_16 = arith.constant 0 : index
    %20 = vector.load %arg7[%c0_15, %c0_16] : memref<1x8xf32, #tpu.memory_space<vmem>>, vector<1x8xf32>
    %21 = vector.broadcast %20 : vector<1x8xf32> to vector<8x8xf32>
    %22 = arith.addf %19, %21 : vector<8x8xf32>
    %c0_17 = arith.constant 0 : index
    %c0_18 = arith.constant 0 : index
    %23 = vector.load %arg8[%c0_17, %c0_18] : memref<8x8xf32, #tpu.memory_space<vmem>>, vector<8x8xf32>
    tpu.vector_store %arg8[%c0_17, %c0_18], %22 {strides = array<i32>} : memref<8x8xf32, #tpu.memory_space<vmem>>, vector<8x8xf32>,
    return
  }
  func.func @transform_0(%arg0: i32) -> (i32, i32) {
    %c0_i32 = arith.constant 0 : i32
    %c0_i32_0 = arith.constant 0 : i32
    return %arg0, %c0_i32 : i32, i32
  }
  func.func @transform_1(%arg0: i32) -> (i32, i32) {
    %c0_i32 = arith.constant 0 : i32
    %c0_i32_0 = arith.constant 0 : i32
    %c0_i32_1 = arith.constant 0 : i32
    return %c0_i32, %c0_i32_0 : i32, i32
  }
  func.func @transform_2(%arg0: i32) -> (i32, i32) {
    %c0_i32 = arith.constant 0 : i32
    %c0_i32_0 = arith.constant 0 : i32
    %c0_i32_1 = arith.constant 0 : i32
    return %c0_i32, %c0_i32_0 : i32, i32
  }
  func.func @transform_3(%arg0: i32) -> (i32, i32) {
    %c0_i32 = arith.constant 0 : i32
    %c0_i32_0 = arith.constant 0 : i32
    %c0_i32_1 = arith.constant 0 : i32
    return %c0_i32, %c0_i32_0 : i32, i32
  }
  func.func @transform_4(%arg0: i32) -> (i32, i32) {
    %c0_i32 = arith.constant 0 : i32
    %c0_i32_0 = arith.constant 0 : i32
    %c0_i32_1 = arith.constant 0 : i32
    return %c0_i32, %c0_i32_0 : i32, i32
  }
  func.func @transform_5(%arg0: i32) -> (i32, i32) {
    %c0_i32 = arith.constant 0 : i32
    %c0_i32_0 = arith.constant 0 : i32
    %c0_i32_1 = arith.constant 0 : i32
    return %c0_i32, %c0_i32_0 : i32, i32
  }
  func.func @transform_6(%arg0: i32) -> (i32, i32) {
    %c0_i32 = arith.constant 0 : i32
    %c0_i32_0 = arith.constant 0 : i32
    %c0_i32_1 = arith.constant 0 : i32
    return %c0_i32, %c0_i32_0 : i32, i32
  }
  func.func @transform_7(%arg0: i32) -> (i32, i32) {
    %c0_i32 = arith.constant 0 : i32
    %c0_i32_0 = arith.constant 0 : i32
    return %arg0, %c0_i32 : i32, i32
  }
}

</mosaic_0001>

<bundles_post_ra>
// kernel: tpu_custom_call.1
= control target key start
LH: loop header
LB: loop body
LE: loop exit
PB: predicated region body
PF: predicated region fallthrough
CT: control target
= control target key end

     0   :  { %vm50_vm0 = vcmask 1043456   ;;  %s418_s0 = inlined_call_operand.vmem [shape: f32[8,24], index: 0, kind: input, shape index: {}]   ;;  %s419_s1 = inlined_call_operand.vmem [shape: bf16[24,128], index: 1, kind: input, shape index: {}]   ;;  %s420_s2 = inlined_call_operand.vmem [shape: f32[1,128], index: 2, kind: input, shape index: {}]   ;;  %s421_s3 = inlined_call_operand.vmem [shape: bf16[128,64], index: 3, kind: input, shape index: {}]   ;;  %s422_s4 = inlined_call_operand.vmem [shape: f32[1,64], index: 4, kind: input, shape index: {}]   ;;  %s423_s5 = inlined_call_operand.vmem [shape: bf16[64,8], index: 5, kind: input, shape index: {}]   ;;  %s424_s6 = inlined_call_operand.vmem [shape: f32[1,8], index: 6, kind: input, shape index: {}]   ;;  %s425_s7 = inlined_call_operand.hbm [shape: f32[8,8], index: 7, kind: output, shape index: {}]  }
   0x1   :  { %v32_v0 = vld [vmem:[%s419_s1 + $0x8] sm:$0xf]  ;;  %v285_v2 = vld [vmem:[%s421_s3 + $0x38] sm:$0xff]  ;;  %v284_v4 = vld [vmem:[%s421_s3 + $0x30] sm:$0xff] }
   0x2   :  { %v42_v1 = vunpack.c.l.b16 %v32_v0  ;;  %137 = vmatpush.bf16.msra.mxu1 %v285_v2 }
   0x4   :  { %v44_v3 = vpack.c.b16 %v42_v1, %v42_v1 }
   0x5   :  { %12 = vsyncpa [#allocation3], 0  ;;  %v277_v6 = vld [vmem:[%s419_s1] sm:$0xff]  ;;  %v283_v8 = vld [vmem:[%s421_s3 + $0x28] sm:$0xff]  ;;  %vm46_vm1 = vcmask 195584   ;;  %vm188_vm2 = vcmask 523264  }
   0x6   :  { %v52_v5 = vsel %vm50_vm0, %v44_v3, 0  ;;  %v28_v7 = vld [vmem:[%s418_s0] sm:$0xff]  ;;  %138 = vmatpush.bf16.msra.mxu1 %v284_v4  ;;  %v281_v11 = vld [vmem:[%s421_s3 + $0x18] sm:$0xff]  ;;  %v280_v12 = vld [vmem:[%s421_s3 + $0x10] sm:$0xff]  ;;  %s320_s10 = smov [#allocation2]   ;;  %s214_s13 = sshll.u32 %s425_s7, 4  ;;  %s215_s13 = int_to_ptr.hbm [resolvable:$true] %s214_s13 }
   0x7   :  { %60 = vmatpush.bf16.msra.mxu0 %v52_v5  ;;  %v29_v9 = vpack.c.bf16 %v28_v7, %v28_v7  ;;  %v282_v10 = vld [vmem:[%s421_s3 + $0x20] sm:$0xff]  ;;  %v279_v13 = vld [vmem:[%s421_s3 + $0x8] sm:$0xff]  ;;  %v289_v15 = vld [vmem:[%s423_s5 + $0x18] sm:$0xff]  ;;  %s212_s11 = sshll.u32 %s320_s10, 4  ;;  %vm205_vm3 = vcmask 64512   ;;  %s213_s11 = int_to_ptr.vmem [resolvable:$true] %s212_s11 }
   0x8   :  { %v278_v14 = vld [vmem:[%s421_s3] sm:$0xff]  ;;  %196 = vmatpush.bf16.msra.mxu2 %v289_v15  ;;  %v288_v16 = vld [vmem:[%s423_s5 + $0x10] sm:$0xff]  ;;  %v287_v23 = vld [vmem:[%s423_s5 + $0x8] sm:$0xff] }
   0x9   :  { %v291_v17 = vld [vmem:[%s420_s2] ss:$0 sm:$0xff] }
   0xa   :  { %139 = vmatpush.bf16.msra.mxu1 %v283_v8  ;;  %v286_v24 = vld [vmem:[%s423_s5] sm:$0xff] }
   0xb   :  { %61 = vmatpush.bf16.msra.mxu0 %v277_v6  ;;  %v292_v25 = vld [vmem:[%s422_s4] ss:$0 sm:$0xff] }
   0xc   :  { %197 = vmatpush.bf16.msra.mxu2 %v288_v16  ;;  %v293_v31 = vld [vmem:[%s424_s6] ss:$0 sm:$0xff] }
   0xe   :  { %227 = vmatmul.msk.bf16.vlgmr.msra.gmra.mxu0 %vm46_vm1, %v29_v9  ;;  %140 = vmatpush.bf16.msra.mxu1 %v282_v10 }
  0x10   :  { %198 = vmatpush.bf16.msra.mxu2 %v287_v23 }
  0x12   :  { %141 = vmatpush.bf16.msra.mxu1 %v281_v11 }
  0x14   :  { %199 = vmatpush.bf16.msra.mxu2 %v286_v24 }
  0x16   :  { %142 = vmatpush.bf16.msra.mxu1 %v280_v12 }
  0x1a   :  { %143 = vmatpush.bf16.msra.mxu1 %v279_v13 }
  0x1e   :  { %144 = vmatpush.bf16.msra.mxu1 %v278_v14 }
  0x8b   :  { %v63_v18 = vpop.f32.mrf.mxu0 }
  0x8c   :  { %v64_v19 = vadd.f32 %v291_v17, %v63_v18 }
  0x8e   :  { %v67_v20 = vmax.f32 %v64_v19, 0.0 }
  0x90   :  { %v68_v21 = vpack.c.bf16 %v67_v20, %v67_v20 }
  0x92   :  { %145 = vmatmul.bf16.vlgmr.msra.gmra.mxu1 %v68_v21 }
  0x93   :  { %v65_v22 = vpop.f32.mrf.mxu0 }
 0x10f   :  { %v146_v26 = vpop.f32.mrf.mxu1 }
 0x110   :  { %v147_v27 = vadd.f32 %v292_v25, %v146_v26 }
 0x112   :  { %v150_v28 = vmax.f32 %v147_v27, 0.0 }
 0x114   :  { %v151_v29 = vpack.c.bf16 %v150_v28, %v150_v28 }
 0x116   :  { %276 = vmatmul.msk.bf16.vlgmr.msra.gmra.mxu2 %vm188_vm2, %v151_v29 }
 0x117   :  { %v148_v30 = vpop.f32.mrf.mxu1 }
 0x199   :  { %v201_v32 = vpop.f32.mrf.mxu2 }
 0x19a   :  { %v202_v33 = vadd.f32 %v293_v31, %v201_v32 }
 0x19c   :  { %206 = vst.msk [vmem:[#allocation2] sm:$0xff] %vm205_vm3, %v202_v33 }
 0x19d   :  { %217 = dma.vmem_to_hbm [thread:$0]  %s213_s11, 128, %s215_s13, [#allocation3]  }
 0x1a1   :  { %v203_v34 = vpop.f32.mrf.mxu2 }
 0x1a2   :  { %318 = dma.done.wait [#allocation3], 128  }
 0x1a3   :  { %319 = vsyncadd [#allocation3], 4294967168 }
 0x1a4   :  { %222 = vsyncpa [#allocation3], 1 }

</bundles_post_ra>
